<compile_context>
chip_gen: v7x
topology: tpu7x:2x2x1
jax: 0.10.0
libtpu: 0.0.40
codegen_flags: <defaults>
</compile_context>

<pallas_src>
import functools

import jax
import jax.numpy as jnp
from jax.experimental import pallas as pl
from jax.experimental.pallas import tpu as pltpu


def _round_up(n, m):
    return ((n + m - 1) // m) * m


def _mish(x):
    # mish(x) = x * tanh(softplus(x)) and tanh(softplus(x)) = (s^2-1)/(s^2+1)
    # with s = 1 + exp(x): one EUP exp + one EUP approx reciprocal, no log/tanh.
    # Clamping x at 20 already makes (s^2-1)*(1/(s^2+1)) evaluate to ~1.0 in
    # f32 for large x, so no extra saturation select is needed.
    xc = jnp.minimum(x, 20.0)
    s = 1.0 + jnp.exp(xc)
    s2 = s * s
    t = (s2 - 1.0) * pl.reciprocal(s2 + 1.0, approx=True)
    return x * t


def _mlp_kernel(n_layers, *refs):
    """Fused MLP: refs = (x_ref, w0, b0, w1, b1, ..., w_{L-1}, b_{L-1}, out_ref)."""
    x_ref = refs[0]
    out_ref = refs[-1]
    wb_refs = refs[1:-1]

    h = x_ref[...]                                        # f32 activations
    for layer in range(n_layers):
        w = wb_refs[2 * layer][...]                       # bf16 -> fast MXU path
        b = wb_refs[2 * layer + 1][...]                   # f32 (1, d_out) bias
        h = jnp.dot(h.astype(jnp.bfloat16), w,
                    preferred_element_type=jnp.float32) + b
        if layer != n_layers - 1:                         # activation on all but last
            h = _mish(h)                                  # f32 on VPU/EUP
    out_ref[...] = h.astype(out_ref.dtype)


def _pick_tile_b(batch, max_tile_b=None):
    """Generation-aware batch-tile size (sublane-aligned)."""
    try:
        kind = jax.devices()[0].device_kind.lower()
    except Exception:  # pragma: no cover - defensive, keeps script runnable
        kind = ""
    is_v5e = ("v5e" in kind) or ("v5 lite" in kind) or ("v5litepod" in kind)
    is_v7 = "v7" in kind
    if max_tile_b is None:
        # v5e: >~256 rows of live f32 activation + mish temporaries spill the
        # 64-vreg file and contend with its single vector-store slot.
        # v6e/v7x: bigger tiles amortize the ~0.35us per-grid-step overhead.
        max_tile_b = 256 if is_v5e else 512
    b8 = _round_up(batch, 8)
    tile = min(max_tile_b, b8)
    if is_v7 and b8 >= 16:
        # Dual TensorCore: make sure both cores get at least one batch tile.
        tile = min(tile, _round_up(pl.cdiv(b8, 2), 8))
    return max(8, _round_up(tile, 8))


def mlp_decoder_forward(x, weights, biases, out_size, out_channels, max_tile_b=None):
    """Pallas implementation of MLPDecoder.forward (n_groups=1, no norm layers).

    x       : (batch, in_channels, in_size) float32
    weights : list of (d_in, d_out) arrays
    biases  : list of (d_out,) arrays
    returns : (batch, out_size, out_channels)
    """
    B = x.shape[0]
    x2d = x.reshape(B, -1)                       # View([-1, in_size*in_channels])
    d0 = x2d.shape[1]
    n_layers = len(weights)
    dims = [d0] + [w.shape[1] for w in weights]
    d_out = dims[-1]
    assert d_out == out_size * out_channels

    # Batch tiling only; feature dims use full-extent blocks (no HBM lane pad).
    tile_b = _pick_tile_b(B, max_tile_b)
    b_pad = _round_up(B, tile_b)
    x_p = x2d if b_pad == B else jnp.zeros((b_pad, d0), x2d.dtype).at[:B].set(x2d)

    # One-time parameter prep (cache it in production): bf16 weights feed the
    # MXU at full rate and halve weight VMEM/DMA bytes; biases stay f32.
    args = [x_p]
    in_specs = [pl.BlockSpec((tile_b, d0), lambda i: (i, 0))]
    w_bytes = 0
    for w, b in zip(weights, biases):
        d_in, d_o = w.shape
        args.append(w.astype(jnp.bfloat16))
        args.append(b.astype(jnp.float32).reshape(1, d_o))
        # Constant block index -> weights/biases stay VMEM-resident across grid.
        in_specs.append(pl.BlockSpec((d_in, d_o), lambda i: (0, 0)))
        in_specs.append(pl.BlockSpec((1, d_o), lambda i: (0, 0)))
        w_bytes += d_in * d_o * 2 + d_o * 4

    # Scoped-VMEM budget: double-buffered x/out tiles + (double-buffered)
    # resident weights + headroom.  Never below the 32 MiB default, capped at
    # v7x's 64 MiB physical VMEM.
    # TODO(synk): mark the constant weight/bias specs pipeline_mode=pl.Buffered(1)
    # to drop their second buffer on v7x once that knob is universally available.
    act_bytes = 2 * tile_b * (d0 + d_out) * 4
    vmem_limit = int(min(max(2 * w_bytes + act_bytes + (8 << 20), 32 << 20), 64 << 20))

    flops = 2 * b_pad * sum(a * c for a, c in zip(dims[:-1], dims[1:]))
    transcendentals = 2 * b_pad * sum(dims[1:-1])     # exp + rcp per hidden unit
    bytes_accessed = b_pad * d0 * 4 + w_bytes + b_pad * d_out * 4

    out_p = pl.pallas_call(
        functools.partial(_mlp_kernel, n_layers),
        grid=(b_pad // tile_b,),
        in_specs=in_specs,
        out_specs=pl.BlockSpec((tile_b, d_out), lambda i: (i, 0)),
        out_shape=jax.ShapeDtypeStruct((b_pad, d_out), x.dtype),
        compiler_params=pltpu.CompilerParams(
            dimension_semantics=("parallel",),    # batch tiles across TCs on v7x
            vmem_limit_bytes=vmem_limit,
        ),
        cost_estimate=pl.CostEstimate(
            flops=flops,
            transcendentals=transcendentals,
            bytes_accessed=bytes_accessed,
        ),
    )(*args)

    out = out_p if b_pad == B else out_p[:B]
    return out.reshape(B, out_size, out_channels)   # View([-1, out_size, out_channels])


def _reference_forward(x, weights, biases, out_size, out_channels):
    """Pure-JAX (f32) reference mirroring the torch module."""
    B = x.shape[0]
    h = x.reshape(B, -1).astype(jnp.float32)
    for i, (w, b) in enumerate(zip(weights, biases)):
        h = h @ w + b
        if i != len(weights) - 1:
            h = h * jnp.tanh(jax.nn.softplus(h))
    return h.reshape(B, out_size, out_channels)


if __name__ == "__main__":
    # Module hyper-parameters (small, consistent with MLPDecoder.__init__).
    batch = 2
    in_size, in_channels = 16, 4          # d0 = 64
    out_size, out_channels = 8, 4         # d_out = 32
    net_hidden = [32, 32]

    sizes = [in_size * in_channels] + net_hidden + [out_size * out_channels]

    key = jax.random.PRNGKey(0)
    k_x, *k_params = jax.random.split(key, 1 + 2 * (len(sizes) - 1))

    x = jax.random.normal(k_x, (batch, in_channels, in_size), dtype=jnp.float32)

    weights, biases = [], []
    for li, (d_in, d_o) in enumerate(zip(sizes[:-1], sizes[1:])):
        kw, kb = k_params[2 * li], k_params[2 * li + 1]
        scale = 1.0 / jnp.sqrt(jnp.float32(d_in))    # torch nn.Linear-style init scale
        weights.append(jax.random.uniform(kw, (d_in, d_o), jnp.float32, -scale, scale))
        biases.append(jax.random.uniform(kb, (d_o,), jnp.float32, -scale, scale))

    out = mlp_decoder_forward(x, weights, biases, out_size, out_channels)
    out = jax.block_until_ready(out)

    ref = _reference_forward(x, weights, biases, out_size, out_channels)
    assert out.shape == (batch, out_size, out_channels), out.shape
    # bf16 MXU operands + approx reciprocal in mish -> compare at bf16-level tolerance.
    assert jnp.allclose(out, ref, atol=2e-2, rtol=2e-2), "mismatch vs reference"

    print("KERNEL_OK")
</pallas_src>

<mosaic_0001>
module attributes {stable_mosaic.version = 11 : i64} {
  func.func @_mlp_kernel(%arg0: i32, %arg1: memref<8x64xf32, #tpu.memory_space<vmem>>, %arg2: memref<64x32xbf16, #tpu.memory_space<vmem>>, %arg3: memref<1x32xf32, #tpu.memory_space<vmem>>, %arg4: memref<32x32xbf16, #tpu.memory_space<vmem>>, %arg5: memref<1x32xf32, #tpu.memory_space<vmem>>, %arg6: memref<32x32xbf16, #tpu.memory_space<vmem>>, %arg7: memref<1x32xf32, #tpu.memory_space<vmem>>, %arg8: memref<8x32xf32, #tpu.memory_space<vmem>>) attributes {dimension_semantics = [#tpu.dimension_semantics<parallel>], iteration_bounds = array<i64: 1>, scalar_prefetch = 0 : i64, scratch_operands = 0 : i64, tpu.core_type = #tpu.core_type<tc>, window_params = [{transform_indices = @transform_0, window_bounds = array<i64: 8, 64>}, {pipeline_mode = #tpu.pipeline_mode<synchronous>, transform_indices = @transform_1, window_bounds = array<i64: 64, 32>}, {pipeline_mode = #tpu.pipeline_mode<synchronous>, transform_indices = @transform_2, window_bounds = array<i64: 1, 32>}, {pipeline_mode = #tpu.pipeline_mode<synchronous>, transform_indices = @transform_3, window_bounds = array<i64: 32, 32>}, {pipeline_mode = #tpu.pipeline_mode<synchronous>, transform_indices = @transform_4, window_bounds = array<i64: 1, 32>}, {pipeline_mode = #tpu.pipeline_mode<synchronous>, transform_indices = @transform_5, window_bounds = array<i64: 32, 32>}, {pipeline_mode = #tpu.pipeline_mode<synchronous>, transform_indices = @transform_6, window_bounds = array<i64: 1, 32>}, {transform_indices = @transform_7, window_bounds = array<i64: 8, 32>}]} {
    %c0 = arith.constant 0 : index
    %c0_0 = arith.constant 0 : index
    %0 = vector.load %arg1[%c0, %c0_0] : memref<8x64xf32, #tpu.memory_space<vmem>>, vector<8x64xf32>
    %c0_1 = arith.constant 0 : index
    %c0_2 = arith.constant 0 : index
    %1 = vector.load %arg2[%c0_1, %c0_2] : memref<64x32xbf16, #tpu.memory_space<vmem>>, vector<64x32xbf16>
    %c0_3 = arith.constant 0 : index
    %c0_4 = arith.constant 0 : index
    %2 = vector.load %arg3[%c0_3, %c0_4] : memref<1x32xf32, #tpu.memory_space<vmem>>, vector<1x32xf32>
    %3 = arith.truncf %0 : vector<8x64xf32> to vector<8x64xbf16>
    %cst = arith.constant dense<0.000000e+00> : vector<8x32xf32>
    %4 = tpu.matmul %3, %1, %cst {dimension_numbers = #tpu.dot_dimension_numbers<[1], [0], [0], [1], [0, 0, 1, 1], [], []>} : vector<8x64xbf16>, vector<64x32xbf16>, vector<8x32xf32> -> vector<8x32xf32>
    %5 = vector.broadcast %2 : vector<1x32xf32> to vector<8x32xf32>
    %6 = arith.addf %4, %5 : vector<8x32xf32>
    %cst_5 = arith.constant 2.000000e+01 : f32
    %7 = vector.broadcast %cst_5 : f32 to vector<8x32xf32>
    %8 = arith.minimumf %6, %7 : vector<8x32xf32>
    %9 = math.exp %8 : vector<8x32xf32>
    %cst_6 = arith.constant 1.000000e+00 : f32
    %10 = vector.broadcast %cst_6 : f32 to vector<8x32xf32>
    %11 = arith.addf %10, %9 : vector<8x32xf32>
    %12 = arith.mulf %11, %11 : vector<8x32xf32>
    %cst_7 = arith.constant 1.000000e+00 : f32
    %13 = vector.broadcast %cst_7 : f32 to vector<8x32xf32>
    %14 = arith.subf %12, %13 : vector<8x32xf32>
    %cst_8 = arith.constant 1.000000e+00 : f32
    %15 = vector.broadcast %cst_8 : f32 to vector<8x32xf32>
    %16 = arith.addf %12, %15 : vector<8x32xf32>
    %17 = tpu.reciprocal %16 {approx = true} : vector<8x32xf32> -> vector<8x32xf32>
    %18 = arith.mulf %14, %17 : vector<8x32xf32>
    %19 = arith.mulf %6, %18 : vector<8x32xf32>
    %c0_9 = arith.constant 0 : index
    %c0_10 = arith.constant 0 : index
    %20 = vector.load %arg4[%c0_9, %c0_10] : memref<32x32xbf16, #tpu.memory_space<vmem>>, vector<32x32xbf16>
    %c0_11 = arith.constant 0 : index
    %c0_12 = arith.constant 0 : index
    %21 = vector.load %arg5[%c0_11, %c0_12] : memref<1x32xf32, #tpu.memory_space<vmem>>, vector<1x32xf32>
    %22 = arith.truncf %19 : vector<8x32xf32> to vector<8x32xbf16>
    %cst_13 = arith.constant dense<0.000000e+00> : vector<8x32xf32>
    %23 = tpu.matmul %22, %20, %cst_13 {dimension_numbers = #tpu.dot_dimension_numbers<[1], [0], [0], [1], [0, 0, 1, 1], [], []>} : vector<8x32xbf16>, vector<32x32xbf16>, vector<8x32xf32> -> vector<8x32xf32>
    %24 = vector.broadcast %21 : vector<1x32xf32> to vector<8x32xf32>
    %25 = arith.addf %23, %24 : vector<8x32xf32>
    %cst_14 = arith.constant 2.000000e+01 : f32
    %26 = vector.broadcast %cst_14 : f32 to vector<8x32xf32>
    %27 = arith.minimumf %25, %26 : vector<8x32xf32>
    %28 = math.exp %27 : vector<8x32xf32>
    %cst_15 = arith.constant 1.000000e+00 : f32
    %29 = vector.broadcast %cst_15 : f32 to vector<8x32xf32>
    %30 = arith.addf %29, %28 : vector<8x32xf32>
    %31 = arith.mulf %30, %30 : vector<8x32xf32>
    %cst_16 = arith.constant 1.000000e+00 : f32
    %32 = vector.broadcast %cst_16 : f32 to vector<8x32xf32>
    %33 = arith.subf %31, %32 : vector<8x32xf32>
    %cst_17 = arith.constant 1.000000e+00 : f32
    %34 = vector.broadcast %cst_17 : f32 to vector<8x32xf32>
    %35 = arith.addf %31, %34 : vector<8x32xf32>
    %36 = tpu.reciprocal %35 {approx = true} : vector<8x32xf32> -> vector<8x32xf32>
    %37 = arith.mulf %33, %36 : vector<8x32xf32>
    %38 = arith.mulf %25, %37 : vector<8x32xf32>
    %c0_18 = arith.constant 0 : index
    %c0_19 = arith.constant 0 : index
    %39 = vector.load %arg6[%c0_18, %c0_19] : memref<32x32xbf16, #tpu.memory_space<vmem>>, vector<32x32xbf16>
    %c0_20 = arith.constant 0 : index
    %c0_21 = arith.constant 0 : index
    %40 = vector.load %arg7[%c0_20, %c0_21] : memref<1x32xf32, #tpu.memory_space<vmem>>, vector<1x32xf32>
    %41 = arith.truncf %38 : vector<8x32xf32> to vector<8x32xbf16>
    %cst_22 = arith.constant dense<0.000000e+00> : vector<8x32xf32>
    %42 = tpu.matmul %41, %39, %cst_22 {dimension_numbers = #tpu.dot_dimension_numbers<[1], [0], [0], [1], [0, 0, 1, 1], [], []>} : vector<8x32xbf16>, vector<32x32xbf16>, vector<8x32xf32> -> vector<8x32xf32>
    %43 = vector.broadcast %40 : vector<1x32xf32> to vector<8x32xf32>
    %44 = arith.addf %42, %43 : vector<8x32xf32>
    %c0_23 = arith.constant 0 : index
    %c0_24 = arith.constant 0 : index
    %45 = vector.load %arg8[%c0_23, %c0_24] : memref<8x32xf32, #tpu.memory_space<vmem>>, vector<8x32xf32>
    tpu.vector_store %arg8[%c0_23, %c0_24], %44 {strides = array<i32>} : memref<8x32xf32, #tpu.memory_space<vmem>>, vector<8x32xf32>,
    return
  }
  func.func @transform_0(%arg0: i32) -> (i32, i32) {
    %c0_i32 = arith.constant 0 : i32
    %c0_i32_0 = arith.constant 0 : i32
    return %arg0, %c0_i32 : i32, i32
  }
  func.func @transform_1(%arg0: i32) -> (i32, i32) {
    %c0_i32 = arith.constant 0 : i32
    %c0_i32_0 = arith.constant 0 : i32
    %c0_i32_1 = arith.constant 0 : i32
    return %c0_i32, %c0_i32_0 : i32, i32
  }
  func.func @transform_2(%arg0: i32) -> (i32, i32) {
    %c0_i32 = arith.constant 0 : i32
    %c0_i32_0 = arith.constant 0 : i32
    %c0_i32_1 = arith.constant 0 : i32
    return %c0_i32, %c0_i32_0 : i32, i32
  }
  func.func @transform_3(%arg0: i32) -> (i32, i32) {
    %c0_i32 = arith.constant 0 : i32
    %c0_i32_0 = arith.constant 0 : i32
    %c0_i32_1 = arith.constant 0 : i32
    return %c0_i32, %c0_i32_0 : i32, i32
  }
  func.func @transform_4(%arg0: i32) -> (i32, i32) {
    %c0_i32 = arith.constant 0 : i32
    %c0_i32_0 = arith.constant 0 : i32
    %c0_i32_1 = arith.constant 0 : i32
    return %c0_i32, %c0_i32_0 : i32, i32
  }
  func.func @transform_5(%arg0: i32) -> (i32, i32) {
    %c0_i32 = arith.constant 0 : i32
    %c0_i32_0 = arith.constant 0 : i32
    %c0_i32_1 = arith.constant 0 : i32
    return %c0_i32, %c0_i32_0 : i32, i32
  }
  func.func @transform_6(%arg0: i32) -> (i32, i32) {
    %c0_i32 = arith.constant 0 : i32
    %c0_i32_0 = arith.constant 0 : i32
    %c0_i32_1 = arith.constant 0 : i32
    return %c0_i32, %c0_i32_0 : i32, i32
  }
  func.func @transform_7(%arg0: i32) -> (i32, i32) {
    %c0_i32 = arith.constant 0 : i32
    %c0_i32_0 = arith.constant 0 : i32
    return %arg0, %c0_i32 : i32, i32
  }
}

</mosaic_0001>

<bundles_post_ra>
// kernel: tpu_custom_call.1
= control target key start
LH: loop header
LB: loop body
LE: loop exit
PB: predicated region body
PF: predicated region fallthrough
CT: control target
= control target key end

     0   :  { %v381_v1 = vmov 0.0   ;;  %vm382_vm0 = vmmov 0   ;;  %s478_s0 = inlined_call_operand.vmem [shape: f32[8,64], index: 0, kind: input, shape index: {}]   ;;  %s479_s1 = inlined_call_operand.vmem [shape: bf16[64,32], index: 1, kind: input, shape index: {}]   ;;  %s480_s2 = inlined_call_operand.vmem [shape: f32[1,32], index: 2, kind: input, shape index: {}]   ;;  %s481_s3 = inlined_call_operand.vmem [shape: bf16[32,32], index: 3, kind: input, shape index: {}]   ;;  %s482_s4 = inlined_call_operand.vmem [shape: f32[1,32], index: 4, kind: input, shape index: {}]   ;;  %s483_s5 = inlined_call_operand.vmem [shape: bf16[32,32], index: 5, kind: input, shape index: {}]   ;;  %s484_s6 = inlined_call_operand.vmem [shape: f32[1,32], index: 6, kind: input, shape index: {}]   ;;  %s485_s7 = inlined_call_operand.hbm [shape: f32[8,32], index: 7, kind: output, shape index: {}]  }
   0x1   :  { %v341_v0 = vld [vmem:[%s479_s1] sm:$0xff]   ;;  %310 = vmatprep.subr.bf16.mxu0 %v381_v1  ;;  %322 = vmatprep.subr.bf16.mxu1 %v381_v1  ;;  %v342_v2 = vld [vmem:[%s479_s1 + $0x8] sm:$0xff]   ;;  %v343_v3 = vld [vmem:[%s479_s1 + $0x10] sm:$0xff]  }
   0x2   :  { %311 = vmatpush3.bf16.msra.mxu0 %v341_v0  ;;  %318 = vmatprep.mubr.msk.bf16.mxu0 %vm382_vm0, %v381_v1 }
   0x3   :  { %312 = vmatprep.subr.bf16.mxu0 %v381_v1  ;;  %326 = vmatprep.mubr.msk.bf16.mxu1 %vm382_vm0, %v381_v1 }
   0x6   :  { %313 = vmatpush3.bf16.msra.mxu0 %v342_v2 }
   0x7   :  { %314 = vmatprep.subr.bf16.mxu0 %v381_v1 }
   0x8   :  { %12 = vsyncpa [#allocation3], 0  ;;  %v344_v4 = vld [vmem:[%s479_s1 + $0x18] sm:$0xff]   ;;  %v28_v5 = vld [vmem:[%s478_s0] sm:$0xff]  ;;  %vm69_vm1 = vcmask 523264   ;;  %vm147_vm2 = vcmask 261120  }
   0x9   :  { %v38_v6 = vpack.c.bf16 %v28_v5, %v28_v5  ;;  %v345_v7 = vld [vmem:[%s481_s3] sm:$0xff]   ;;  %v346_v8 = vld [vmem:[%s481_s3 + $0x8] sm:$0xff]   ;;  %s383_s19 = smov [#allocation2]  }
   0xa   :  { %315 = vmatpush3.bf16.msra.mxu0 %v343_v3  ;;  %323 = vmatpush3.bf16.msra.mxu1 %v345_v7  ;;  %v283_v9 = vld [vmem:[%s480_s2] ss:$0 sm:$0xff]  ;;  %v348_v27 = vld [vmem:[%s483_s5 + $0x8] sm:$0xff]   ;;  %s275_s20 = sshll.u32 %s383_s19, 4  ;;  %s276_s20 = int_to_ptr.vmem [resolvable:$true] %s275_s20 }
   0xb   :  { %316 = vmatprep.subr.bf16.mxu0 %v381_v1  ;;  %324 = vmatprep.subr.bf16.mxu1 %v381_v1  ;;  %v347_v26 = vld [vmem:[%s483_s5] sm:$0xff]   ;;  %s357_s21 = scalar_lea.vmem %s276_s20, 128  ;;  %p362_p1 = scmp.lt.s32.totalorder %s276_s20, %s276_s20 }
   0xc   :  { %v290_v28 = vld [vmem:[%s482_s4] ss:$0 sm:$0xff]  ;;  %p358_p0 = scmp.ne.s32.totalorder %s276_s20, %s357_s21  ;;  %p363_p2 = scmp.lt.s32.totalorder %s357_s21, %s357_s21 }
   0xd   :  { %v295_v45 = vld [vmem:[%s484_s6] ss:$0 sm:$0xff] }
   0xe   :  { %317 = vmatpush3.bf16.msra.mxu0 %v344_v4  ;;  %325 = vmatpush3.bf16.msra.mxu1 %v346_v8  ;;  %p364_p3 = por %p363_p2, %p362_p1 }
   0xf   :  { %330 = vmatprep.subr.bf16.mxu1 %v381_v1 }
  0x10   :  { %p365_p4 = pnand %p364_p3, %p358_p0 }
  0x11   :  { %319 = vmatmul.mubr.msk.bf16.vlgmr.msra.gmra.mrb[0].mxu0 %vm69_vm1, %v38_v6 }
  0xe4   :  { %v107_v10 = vpop.f32.mrb[0].mxu0 }
  0xe5   :  { %v108_v11 = vadd.f32 %v283_v9, %v107_v10  ;;  %v320_v12 = vpop.f32.mrb[1].mxu0 }
  0xe6   :  { %v110_v13 = vpop.f32.mrb[2].mxu0 }
  0xe7   :  { %v113_v14 = vmin.f32 %v108_v11, 20.0  ;;  %v321_v15 = vpop.f32.mrb[3].mxu0 }
  0xe9   :  { %v114_v16 = vmul.f32 1.442695, %v113_v14 }
  0xeb   :  { %349 = vpow2.f32 %v114_v16 }
  0xf5   :  { %v350_v17 = vpop.eup %349 }
  0xf6   :  { %v116_v18 = vadd.f32 1.0, %v350_v17 }
  0xf8   :  { %v117_v19 = vmul.f32 %v116_v18, %v116_v18 }
  0xfa   :  { %v119_v20 = vadd.f32 1.0, %v117_v19  ;;  %v289_v21 = vadd.f32 -1.0, %v117_v19 }
  0xfc   :  { %351 = vrcp.f32 %v119_v20 }
 0x106   :  { %v352_v22 = vpop.eup %351 }
 0x107   :  { %v121_v23 = vmul.f32 %v352_v22, %v289_v21 }
 0x109   :  { %v122_v24 = vmul.f32 %v121_v23, %v108_v11 }
 0x10b   :  { %v128_v25 = vpack.c.bf16 %v122_v24, %v122_v24 }
 0x10d   :  { %327 = vmatmul.mubr.msk.bf16.vlgmr.msra.gmra.mrb[0].mxu1 %vm147_vm2, %v128_v25 }
 0x10e   :  { %334 = vmatprep.mubr.msk.bf16.mxu1 %vm382_vm0, %v381_v1  ;;  %331 = vmatpush3.bf16.msra.mxu1 %v347_v26 }
 0x10f   :  { %332 = vmatprep.subr.bf16.mxu1 %v381_v1 }
 0x112   :  { %333 = vmatpush3.bf16.msra.mxu1 %v348_v27 }
 0x1e0   :  { %v185_v29 = vpop.f32.mrb[0].mxu1 }
 0x1e1   :  { %v186_v30 = vadd.f32 %v290_v28, %v185_v29  ;;  %v328_v31 = vpop.f32.mrb[1].mxu1 }
 0x1e2   :  { %v188_v32 = vpop.f32.mrb[2].mxu1 }
 0x1e3   :  { %v191_v33 = vmin.f32 %v186_v30, 20.0  ;;  %v329_v34 = vpop.f32.mrb[3].mxu1 }
 0x1e5   :  { %v192_v35 = vmul.f32 1.442695, %v191_v33 }
 0x1e7   :  { %353 = vpow2.f32 %v192_v35 }
 0x1f1   :  { %v354_v36 = vpop.eup %353 }
 0x1f2   :  { %v194_v37 = vadd.f32 1.0, %v354_v36 }
 0x1f4   :  { %v195_v38 = vmul.f32 %v194_v37, %v194_v37 }
 0x1f6   :  { %v197_v39 = vadd.f32 1.0, %v195_v38  ;;  %v294_v40 = vadd.f32 -1.0, %v195_v38 }
 0x1f8   :  { %355 = vrcp.f32 %v197_v39 }
 0x202   :  { %v356_v41 = vpop.eup %355 }
 0x203   :  { %v199_v42 = vmul.f32 %v356_v41, %v294_v40 }
 0x205   :  { %v200_v43 = vmul.f32 %v199_v42, %v186_v30 }
 0x207   :  { %v206_v44 = vpack.c.bf16 %v200_v43, %v200_v43 }
 0x209   :  { %335 = vmatmul.mubr.msk.bf16.vlgmr.msra.gmra.mrb[4].mxu1 %vm147_vm2, %v206_v44 }
 0x2dc   :  { %v262_v46 = vpop.f32.mrb[4].mxu1 }
 0x2dd   :  { %v263_v47 = vadd.f32 %v295_v45, %v262_v46  ;;  %v336_v48 = vpop.f32.mrb[5].mxu1 }
 0x2de   :  { %v265_v49 = vpop.f32.mrb[6].mxu1 }
 0x2df   :  { %268 = vst.msk [vmem:[#allocation2] sm:$0xff] %vm147_vm2, %v263_v47  ;;  %v337_v50 = vpop.f32.mrb[7].mxu1 }
 0x2e0   :  { %368 = shalt.err (!%p365_p4)
}
 0x2e1   :  { %s369_s6 = scalar_lea.hbm %s485_s7, 128 }
 0x2e2   :  { %p370_p5 = scmp.ne.s32.totalorder %s485_s7, %s369_s6  ;;  %p373_p6 = scmp.lt.u32.totalorder %s369_s6, %s485_s7 }
 0x2e4   :  { %p375_p7 = pnand %p373_p6, %p370_p5 }
 0x2e6   :  { %378 = shalt.err (!%p375_p7)
}
 0x2e7   :  { %278 = dma.vmem_to_hbm [thread:$0]  %s276_s20, 128, %s485_s7, [#allocation3]  }
 0x2e8   :  { %379 = dma.done.wait [#allocation3], 128  }
 0x2e9   :  { %380 = vsyncadd [#allocation3], 4294967168 }
 0x2ea   :  { %282 = vsyncpa [#allocation3], 1 }

</bundles_post_ra>
